<compile_context>
chip_gen: v7x
topology: tpu7x:2x2x1
jax: 0.10.0
libtpu: 0.0.40
codegen_flags: <defaults>
</compile_context>

<pallas_src>
import jax
import jax.numpy as jnp
from jax import lax
from jax.experimental import pallas as pl
from jax.experimental.pallas import tpu as pltpu


def _cvmlp_kernel(xr_ref, xi_ref,
                  w1r_ref, w1i_ref, b1r_ref, b1i_ref,
                  w2r_ref, w2i_ref, b2r_ref, b2i_ref,
                  yr_ref, yi_ref):
    xr = xr_ref[...]
    xi = xi_ref[...]
    w1r = w1r_ref[...]
    w1i = w1i_ref[...]

    # ---- CVLinear #1 (complex matmul + bias), f32 accumulation on MXU ----
    hr = (jnp.dot(xr, w1r, preferred_element_type=jnp.float32)
          - jnp.dot(xi, w1i, preferred_element_type=jnp.float32)
          + b1r_ref[...])
    hi = (jnp.dot(xr, w1i, preferred_element_type=jnp.float32)
          + jnp.dot(xi, w1r, preferred_element_type=jnp.float32)
          + b1i_ref[...])

    # ---- CVReLU fused into the epilogue (VPU slot; ~free next to MXU) ----
    hr = jnp.maximum(hr, 0.0)
    hi = jnp.maximum(hi, 0.0)

    w2r = w2r_ref[...]
    w2i = w2i_ref[...]

    # ---- CVLinear #2 (complex matmul + bias) ----
    yr_ref[...] = (jnp.dot(hr, w2r, preferred_element_type=jnp.float32)
                   - jnp.dot(hi, w2i, preferred_element_type=jnp.float32)
                   + b2r_ref[...])
    yi_ref[...] = (jnp.dot(hr, w2i, preferred_element_type=jnp.float32)
                   + jnp.dot(hi, w2r, preferred_element_type=jnp.float32)
                   + b2i_ref[...])


def cvmlp_forward(x, w1r, w1i, b1r, b1i, w2r, w2i, b2r, b2i, *, tile_b=512):
    """Fused CVMLP forward pass.

    x        : complex64, shape (..., in_features)
    w1r/w1i  : (hidden, in)   -- PyTorch nn.Linear layout (out_features, in_features)
    b1r/b1i  : (hidden,)
    w2r/w2i  : (out, hidden)
    b2r/b2i  : (out,)
    returns  : complex64, shape (..., out_features)
    """
    assert jnp.issubdtype(x.dtype, jnp.complexfloating)
    in_f = w1r.shape[1]
    hid = w1r.shape[0]
    out_f = w2r.shape[0]
    assert x.shape[-1] == in_f

    lead_shape = x.shape[:-1]
    xr = jnp.real(x).astype(jnp.float32).reshape(-1, in_f)
    xi = jnp.imag(x).astype(jnp.float32).reshape(-1, in_f)
    b = xr.shape[0]

    # Weights transposed once to (in, out) so the kernel computes x @ W.
    w1r_t = w1r.T.astype(jnp.float32)
    w1i_t = w1i.T.astype(jnp.float32)
    w2r_t = w2r.T.astype(jnp.float32)
    w2i_t = w2i.T.astype(jnp.float32)
    b1r_2d = b1r.astype(jnp.float32).reshape(1, hid)
    b1i_2d = b1i.astype(jnp.float32).reshape(1, hid)
    b2r_2d = b2r.astype(jnp.float32).reshape(1, out_f)
    b2i_2d = b2i.astype(jnp.float32).reshape(1, out_f)

    # Row tiling: whole batch in one tile if it fits, otherwise tiles whose
    # sublane count is a multiple of 8 (the (8,128) rule applies once the
    # block is not full-extent). Pad the batch to a multiple of the tile.
    if b <= tile_b:
        tb = b
        b_pad = b
    else:
        tb = max(8, (tile_b // 8) * 8)
        b_pad = pl.cdiv(b, tb) * tb
    if b_pad != b:
        pad = b_pad - b
        xr = jnp.pad(xr, ((0, pad), (0, 0)))
        xi = jnp.pad(xi, ((0, pad), (0, 0)))

    grid = (b_pad // tb,)
    row_spec = pl.BlockSpec((tb, in_f), lambda i: (i, 0))
    out_spec = pl.BlockSpec((tb, out_f), lambda i: (i, 0))

    def resident(shape):
        # Full-extent block, same block index every grid step -> stays in VMEM.
        return pl.BlockSpec(shape, lambda i: (0, 0))

    yr, yi = pl.pallas_call(
        _cvmlp_kernel,
        out_shape=(
            jax.ShapeDtypeStruct((b_pad, out_f), jnp.float32),
            jax.ShapeDtypeStruct((b_pad, out_f), jnp.float32),
        ),
        grid=grid,
        in_specs=[
            row_spec, row_spec,
            resident((in_f, hid)), resident((in_f, hid)),
            resident((1, hid)), resident((1, hid)),
            resident((hid, out_f)), resident((hid, out_f)),
            resident((1, out_f)), resident((1, out_f)),
        ],
        out_specs=(out_spec, out_spec),
        compiler_params=pltpu.CompilerParams(
            dimension_semantics=("parallel",),  # shards row tiles across v7x's 2 TCs
        ),
    )(xr, xi, w1r_t, w1i_t, b1r_2d, b1i_2d, w2r_t, w2i_t, b2r_2d, b2i_2d)

    y = lax.complex(yr[:b], yi[:b]).astype(jnp.complex64)
    return y.reshape(lead_shape + (out_f,))


if __name__ == "__main__":
    key = jax.random.PRNGKey(0)
    keys = jax.random.split(key, 10)

    batch = 8
    num_inputs, num_hiddens, num_outputs = 128, 256, 128

    # Complex input.
    x_re = jax.random.normal(keys[0], (batch, num_inputs), dtype=jnp.float32)
    x_im = jax.random.normal(keys[1], (batch, num_inputs), dtype=jnp.float32)
    x = lax.complex(x_re, x_im).astype(jnp.complex64)

    # Parameters in PyTorch nn.Linear layout (out_features, in_features),
    # scaled ~1/sqrt(fan_in) like nn.Linear's default init; biases ~ randn
    # (matches CVLinear's bias init).
    def init_w(k, out_f, in_f):
        return (jax.random.uniform(k, (out_f, in_f), jnp.float32, -1.0, 1.0)
                / jnp.sqrt(float(in_f)))

    w1r = init_w(keys[2], num_hiddens, num_inputs)
    w1i = init_w(keys[3], num_hiddens, num_inputs)
    b1r = jax.random.normal(keys[4], (num_hiddens,), jnp.float32)
    b1i = jax.random.normal(keys[5], (num_hiddens,), jnp.float32)
    w2r = init_w(keys[6], num_outputs, num_hiddens)
    w2i = init_w(keys[7], num_outputs, num_hiddens)
    b2r = jax.random.normal(keys[8], (num_outputs,), jnp.float32)
    b2i = jax.random.normal(keys[9], (num_outputs,), jnp.float32)

    y = cvmlp_forward(x, w1r, w1i, b1r, b1i, w2r, w2i, b2r, b2i)
    jax.block_until_ready(y)

    # Pure-JAX reference (same math as the PyTorch module).
    hr = x_re @ w1r.T - x_im @ w1i.T + b1r
    hi = x_re @ w1i.T + x_im @ w1r.T + b1i
    hr = jnp.maximum(hr, 0.0)
    hi = jnp.maximum(hi, 0.0)
    yr_ref = hr @ w2r.T - hi @ w2i.T + b2r
    yi_ref = hr @ w2i.T + hi @ w2r.T + b2i
    y_ref = lax.complex(yr_ref, yi_ref).astype(jnp.complex64)

    assert y.shape == (batch, num_outputs) and y.dtype == jnp.complex64
    # Tolerance covers MXU-vs-XLA matmul precision differences only; any
    # structural bug (wrong sign / operand) would produce O(1) errors.
    assert jnp.allclose(y, y_ref, atol=3e-2, rtol=3e-2), (
        float(jnp.max(jnp.abs(y - y_ref))))
    print("KERNEL_OK")
</pallas_src>

<mosaic_0001>
module attributes {stable_mosaic.version = 11 : i64} {
  func.func @_cvmlp_kernel(%arg0: i32, %arg1: memref<8x128xf32, #tpu.memory_space<vmem>>, %arg2: memref<8x128xf32, #tpu.memory_space<vmem>>, %arg3: memref<128x256xf32, #tpu.memory_space<vmem>>, %arg4: memref<128x256xf32, #tpu.memory_space<vmem>>, %arg5: memref<1x256xf32, #tpu.memory_space<vmem>>, %arg6: memref<1x256xf32, #tpu.memory_space<vmem>>, %arg7: memref<256x128xf32, #tpu.memory_space<vmem>>, %arg8: memref<256x128xf32, #tpu.memory_space<vmem>>, %arg9: memref<1x128xf32, #tpu.memory_space<vmem>>, %arg10: memref<1x128xf32, #tpu.memory_space<vmem>>, %arg11: memref<8x128xf32, #tpu.memory_space<vmem>>, %arg12: memref<8x128xf32, #tpu.memory_space<vmem>>) attributes {dimension_semantics = [#tpu.dimension_semantics<parallel>], iteration_bounds = array<i64: 1>, scalar_prefetch = 0 : i64, scratch_operands = 0 : i64, tpu.core_type = #tpu.core_type<tc>, window_params = [{transform_indices = @transform_0, window_bounds = array<i64: 8, 128>}, {transform_indices = @transform_1, window_bounds = array<i64: 8, 128>}, {pipeline_mode = #tpu.pipeline_mode<synchronous>, transform_indices = @transform_2, window_bounds = array<i64: 128, 256>}, {pipeline_mode = #tpu.pipeline_mode<synchronous>, transform_indices = @transform_3, window_bounds = array<i64: 128, 256>}, {pipeline_mode = #tpu.pipeline_mode<synchronous>, transform_indices = @transform_4, window_bounds = array<i64: 1, 256>}, {pipeline_mode = #tpu.pipeline_mode<synchronous>, transform_indices = @transform_5, window_bounds = array<i64: 1, 256>}, {pipeline_mode = #tpu.pipeline_mode<synchronous>, transform_indices = @transform_6, window_bounds = array<i64: 256, 128>}, {pipeline_mode = #tpu.pipeline_mode<synchronous>, transform_indices = @transform_7, window_bounds = array<i64: 256, 128>}, {pipeline_mode = #tpu.pipeline_mode<synchronous>, transform_indices = @transform_8, window_bounds = array<i64: 1, 128>}, {pipeline_mode = #tpu.pipeline_mode<synchronous>, transform_indices = @transform_9, window_bounds = array<i64: 1, 128>}, {transform_indices = @transform_10, window_bounds = array<i64: 8, 128>}, {transform_indices = @transform_11, window_bounds = array<i64: 8, 128>}]} {
    %c0 = arith.constant 0 : index
    %c0_0 = arith.constant 0 : index
    %0 = vector.load %arg1[%c0, %c0_0] : memref<8x128xf32, #tpu.memory_space<vmem>>, vector<8x128xf32>
    %c0_1 = arith.constant 0 : index
    %c0_2 = arith.constant 0 : index
    %1 = vector.load %arg2[%c0_1, %c0_2] : memref<8x128xf32, #tpu.memory_space<vmem>>, vector<8x128xf32>
    %c0_3 = arith.constant 0 : index
    %c0_4 = arith.constant 0 : index
    %2 = vector.load %arg3[%c0_3, %c0_4] : memref<128x256xf32, #tpu.memory_space<vmem>>, vector<128x256xf32>
    %c0_5 = arith.constant 0 : index
    %c0_6 = arith.constant 0 : index
    %3 = vector.load %arg4[%c0_5, %c0_6] : memref<128x256xf32, #tpu.memory_space<vmem>>, vector<128x256xf32>
    %cst = arith.constant dense<0.000000e+00> : vector<8x256xf32>
    %4 = tpu.matmul %0, %2, %cst {dimension_numbers = #tpu.dot_dimension_numbers<[1], [0], [0], [1], [0, 0, 1, 1], [], []>} : vector<8x128xf32>, vector<128x256xf32>, vector<8x256xf32> -> vector<8x256xf32>
    %cst_7 = arith.constant dense<0.000000e+00> : vector<8x256xf32>
    %5 = tpu.matmul %1, %3, %cst_7 {dimension_numbers = #tpu.dot_dimension_numbers<[1], [0], [0], [1], [0, 0, 1, 1], [], []>} : vector<8x128xf32>, vector<128x256xf32>, vector<8x256xf32> -> vector<8x256xf32>
    %6 = arith.subf %4, %5 : vector<8x256xf32>
    %c0_8 = arith.constant 0 : index
    %c0_9 = arith.constant 0 : index
    %7 = vector.load %arg5[%c0_8, %c0_9] : memref<1x256xf32, #tpu.memory_space<vmem>>, vector<1x256xf32>
    %8 = vector.broadcast %7 : vector<1x256xf32> to vector<8x256xf32>
    %9 = arith.addf %6, %8 : vector<8x256xf32>
    %cst_10 = arith.constant dense<0.000000e+00> : vector<8x256xf32>
    %10 = tpu.matmul %0, %3, %cst_10 {dimension_numbers = #tpu.dot_dimension_numbers<[1], [0], [0], [1], [0, 0, 1, 1], [], []>} : vector<8x128xf32>, vector<128x256xf32>, vector<8x256xf32> -> vector<8x256xf32>
    %cst_11 = arith.constant dense<0.000000e+00> : vector<8x256xf32>
    %11 = tpu.matmul %1, %2, %cst_11 {dimension_numbers = #tpu.dot_dimension_numbers<[1], [0], [0], [1], [0, 0, 1, 1], [], []>} : vector<8x128xf32>, vector<128x256xf32>, vector<8x256xf32> -> vector<8x256xf32>
    %12 = arith.addf %10, %11 : vector<8x256xf32>
    %c0_12 = arith.constant 0 : index
    %c0_13 = arith.constant 0 : index
    %13 = vector.load %arg6[%c0_12, %c0_13] : memref<1x256xf32, #tpu.memory_space<vmem>>, vector<1x256xf32>
    %14 = vector.broadcast %13 : vector<1x256xf32> to vector<8x256xf32>
    %15 = arith.addf %12, %14 : vector<8x256xf32>
    %cst_14 = arith.constant 0.000000e+00 : f32
    %16 = vector.broadcast %cst_14 : f32 to vector<8x256xf32>
    %17 = arith.maximumf %9, %16 : vector<8x256xf32>
    %cst_15 = arith.constant 0.000000e+00 : f32
    %18 = vector.broadcast %cst_15 : f32 to vector<8x256xf32>
    %19 = arith.maximumf %15, %18 : vector<8x256xf32>
    %c0_16 = arith.constant 0 : index
    %c0_17 = arith.constant 0 : index
    %20 = vector.load %arg7[%c0_16, %c0_17] : memref<256x128xf32, #tpu.memory_space<vmem>>, vector<256x128xf32>
    %c0_18 = arith.constant 0 : index
    %c0_19 = arith.constant 0 : index
    %21 = vector.load %arg8[%c0_18, %c0_19] : memref<256x128xf32, #tpu.memory_space<vmem>>, vector<256x128xf32>
    %cst_20 = arith.constant dense<0.000000e+00> : vector<8x128xf32>
    %22 = tpu.matmul %17, %20, %cst_20 {dimension_numbers = #tpu.dot_dimension_numbers<[1], [0], [0], [1], [0, 0, 1, 1], [], []>} : vector<8x256xf32>, vector<256x128xf32>, vector<8x128xf32> -> vector<8x128xf32>
    %cst_21 = arith.constant dense<0.000000e+00> : vector<8x128xf32>
    %23 = tpu.matmul %19, %21, %cst_21 {dimension_numbers = #tpu.dot_dimension_numbers<[1], [0], [0], [1], [0, 0, 1, 1], [], []>} : vector<8x256xf32>, vector<256x128xf32>, vector<8x128xf32> -> vector<8x128xf32>
    %24 = arith.subf %22, %23 : vector<8x128xf32>
    %c0_22 = arith.constant 0 : index
    %c0_23 = arith.constant 0 : index
    %25 = vector.load %arg9[%c0_22, %c0_23] : memref<1x128xf32, #tpu.memory_space<vmem>>, vector<1x128xf32>
    %26 = vector.broadcast %25 : vector<1x128xf32> to vector<8x128xf32>
    %27 = arith.addf %24, %26 : vector<8x128xf32>
    %c0_24 = arith.constant 0 : index
    %c0_25 = arith.constant 0 : index
    %28 = vector.load %arg11[%c0_24, %c0_25] : memref<8x128xf32, #tpu.memory_space<vmem>>, vector<8x128xf32>
    tpu.vector_store %arg11[%c0_24, %c0_25], %27 {strides = array<i32>} : memref<8x128xf32, #tpu.memory_space<vmem>>, vector<8x128xf32>,
    %cst_26 = arith.constant dense<0.000000e+00> : vector<8x128xf32>
    %29 = tpu.matmul %17, %21, %cst_26 {dimension_numbers = #tpu.dot_dimension_numbers<[1], [0], [0], [1], [0, 0, 1, 1], [], []>} : vector<8x256xf32>, vector<256x128xf32>, vector<8x128xf32> -> vector<8x128xf32>
    %cst_27 = arith.constant dense<0.000000e+00> : vector<8x128xf32>
    %30 = tpu.matmul %19, %20, %cst_27 {dimension_numbers = #tpu.dot_dimension_numbers<[1], [0], [0], [1], [0, 0, 1, 1], [], []>} : vector<8x256xf32>, vector<256x128xf32>, vector<8x128xf32> -> vector<8x128xf32>
    %31 = arith.addf %29, %30 : vector<8x128xf32>
    %c0_28 = arith.constant 0 : index
    %c0_29 = arith.constant 0 : index
    %32 = vector.load %arg10[%c0_28, %c0_29] : memref<1x128xf32, #tpu.memory_space<vmem>>, vector<1x128xf32>
    %33 = vector.broadcast %32 : vector<1x128xf32> to vector<8x128xf32>
    %34 = arith.addf %31, %33 : vector<8x128xf32>
    %c0_30 = arith.constant 0 : index
    %c0_31 = arith.constant 0 : index
    %35 = vector.load %arg12[%c0_30, %c0_31] : memref<8x128xf32, #tpu.memory_space<vmem>>, vector<8x128xf32>
    tpu.vector_store %arg12[%c0_30, %c0_31], %34 {strides = array<i32>} : memref<8x128xf32, #tpu.memory_space<vmem>>, vector<8x128xf32>,
    return
  }
  func.func @transform_0(%arg0: i32) -> (i32, i32) {
    %c0_i32 = arith.constant 0 : i32
    %c0_i32_0 = arith.constant 0 : i32
    return %arg0, %c0_i32 : i32, i32
  }
  func.func @transform_1(%arg0: i32) -> (i32, i32) {
    %c0_i32 = arith.constant 0 : i32
    %c0_i32_0 = arith.constant 0 : i32
    return %arg0, %c0_i32 : i32, i32
  }
  func.func @transform_2(%arg0: i32) -> (i32, i32) {
    %c0_i32 = arith.constant 0 : i32
    %c0_i32_0 = arith.constant 0 : i32
    %c0_i32_1 = arith.constant 0 : i32
    return %c0_i32, %c0_i32_0 : i32, i32
  }
  func.func @transform_3(%arg0: i32) -> (i32, i32) {
    %c0_i32 = arith.constant 0 : i32
    %c0_i32_0 = arith.constant 0 : i32
    %c0_i32_1 = arith.constant 0 : i32
    return %c0_i32, %c0_i32_0 : i32, i32
  }
  func.func @transform_4(%arg0: i32) -> (i32, i32) {
    %c0_i32 = arith.constant 0 : i32
    %c0_i32_0 = arith.constant 0 : i32
    %c0_i32_1 = arith.constant 0 : i32
    return %c0_i32, %c0_i32_0 : i32, i32
  }
  func.func @transform_5(%arg0: i32) -> (i32, i32) {
    %c0_i32 = arith.constant 0 : i32
    %c0_i32_0 = arith.constant 0 : i32
    %c0_i32_1 = arith.constant 0 : i32
    return %c0_i32, %c0_i32_0 : i32, i32
  }
  func.func @transform_6(%arg0: i32) -> (i32, i32) {
    %c0_i32 = arith.constant 0 : i32
    %c0_i32_0 = arith.constant 0 : i32
    %c0_i32_1 = arith.constant 0 : i32
    return %c0_i32, %c0_i32_0 : i32, i32
  }
  func.func @transform_7(%arg0: i32) -> (i32, i32) {
    %c0_i32 = arith.constant 0 : i32
    %c0_i32_0 = arith.constant 0 : i32
    %c0_i32_1 = arith.constant 0 : i32
    return %c0_i32, %c0_i32_0 : i32, i32
  }
  func.func @transform_8(%arg0: i32) -> (i32, i32) {
    %c0_i32 = arith.constant 0 : i32
    %c0_i32_0 = arith.constant 0 : i32
    %c0_i32_1 = arith.constant 0 : i32
    return %c0_i32, %c0_i32_0 : i32, i32
  }
  func.func @transform_9(%arg0: i32) -> (i32, i32) {
    %c0_i32 = arith.constant 0 : i32
    %c0_i32_0 = arith.constant 0 : i32
    %c0_i32_1 = arith.constant 0 : i32
    return %c0_i32, %c0_i32_0 : i32, i32
  }
  func.func @transform_10(%arg0: i32) -> (i32, i32) {
    %c0_i32 = arith.constant 0 : i32
    %c0_i32_0 = arith.constant 0 : i32
    return %arg0, %c0_i32 : i32, i32
  }
  func.func @transform_11(%arg0: i32) -> (i32, i32) {
    %c0_i32 = arith.constant 0 : i32
    %c0_i32_0 = arith.constant 0 : i32
    return %arg0, %c0_i32 : i32, i32
  }
}

</mosaic_0001>

<bundles_post_ra>
// kernel: tpu_custom_call.1
= control target key start
LH: loop header
LB: loop body
LE: loop exit
PB: predicated region body
PF: predicated region fallthrough
CT: control target
= control target key end

     0   :  { %17 = vsyncpa [#allocation3], 0  ;;  %s1886_s0 = inlined_call_operand.hbm [shape: f32[8,128], index: 0, kind: input, shape index: {}]   ;;  %s1887_s1 = inlined_call_operand.hbm [shape: f32[8,128], index: 1, kind: input, shape index: {}]   ;;  %s1888_s2 = inlined_call_operand.hbm [shape: f32[128,256], index: 2, kind: input, shape index: {}]   ;;  %s1889_s3 = inlined_call_operand.hbm [shape: f32[128,256], index: 3, kind: input, shape index: {}]   ;;  %s1890_s4 = inlined_call_operand.vmem [shape: f32[1,256], index: 4, kind: input, shape index: {}]   ;;  %s1891_s5 = inlined_call_operand.vmem [shape: f32[1,256], index: 5, kind: input, shape index: {}]   ;;  %s1892_s6 = inlined_call_operand.hbm [shape: f32[256,128], index: 6, kind: input, shape index: {}]   ;;  %s1893_s7 = inlined_call_operand.hbm [shape: f32[256,128], index: 7, kind: input, shape index: {}]   ;;  %s1894_s8 = inlined_call_operand.vmem [shape: f32[1,128], index: 8, kind: input, shape index: {}]   ;;  %s1895_s9 = inlined_call_operand.vmem [shape: f32[1,128], index: 9, kind: input, shape index: {}]   ;;  %s1896_s10 = inlined_call_operand.hbm [shape: f32[8,128], index: 10, kind: output, shape index: {0}]   ;;  %s1897_s11 = inlined_call_operand.hbm [shape: f32[8,128], index: 11, kind: output, shape index: {1}]  }
   0x1   :  { %18 = vsyncpa [#allocation6], 0 }
   0x2   :  { %19 = vsyncpa [#allocation9], 0 }
   0x3   :  { %20 = vsyncpa [#allocation12], 0 }
   0x4   :  { %21 = vsyncpa [#allocation4], 0 }
   0x5   :  { %22 = vsyncpa [#allocation15], 0  ;;  %s1497_s17 = smov [#allocation5]   ;;  %s1309_s21 = scalar_lea.hbm %s1887_s1, 128 }
   0x6   :  { %s39_s18 = sshll.u32 %s1497_s17, 4  ;;  %p1310_p0 = scmp.ne.s32.totalorder %s1887_s1, %s1309_s21  ;;  %s40_s18 = int_to_ptr.vmem [resolvable:$true] %s39_s18 }
   0x7   :  { %p1313_p1 = scmp.lt.u32.totalorder %s1309_s21, %s1887_s1 }
   0x9   :  { %p1315_p2 = pnand %p1313_p1, %p1310_p0 }
   0xb   :  { %1318 = shalt.err (!%p1315_p2)
}
   0xc   :  { %s1319_s26 = scalar_lea.vmem %s40_s18, 128  ;;  %p1324_p4 = scmp.lt.s32.totalorder %s40_s18, %s40_s18 }
   0xd   :  { %p1320_p3 = scmp.ne.s32.totalorder %s40_s18, %s1319_s26  ;;  %p1325_p5 = scmp.lt.s32.totalorder %s1319_s26, %s1319_s26 }
   0xf   :  { %p1326_p6 = por %p1325_p5, %p1324_p4 }
  0x11   :  { %p1327_p7 = pnand %p1326_p6, %p1320_p3 }
  0x13   :  { %1330 = shalt.err (!%p1327_p7)
}
  0x14   :  { %42 = dma.hbm_to_vmem [thread:$0]  %s1887_s1, 128, %s40_s18, [#allocation6]  }
  0x15   :  { %s1498_s29 = smov [#allocation8]   ;;  %s1499_s12 = smov [#allocation2]  }
  0x16   :  { %s60_s30 = sshll.u32 %s1498_s29, 4  ;;  %s29_s13 = sshll.u32 %s1499_s12, 4  ;;  %s61_s30 = int_to_ptr.vmem [resolvable:$true] %s60_s30  ;;  %s30_s13 = int_to_ptr.vmem [resolvable:$true] %s29_s13 }
  0x17   :  { %s1331_s16 = scalar_lea.hbm %s1889_s3, 4096 }
  0x18   :  { %p1332_p8 = scmp.ne.s32.totalorder %s1889_s3, %s1331_s16  ;;  %p1335_p9 = scmp.lt.u32.totalorder %s1331_s16, %s1889_s3 }
  0x1a   :  { %p1337_p10 = pnand %p1335_p9, %p1332_p8 }
  0x1c   :  { %1340 = shalt.err (!%p1337_p10)
}
  0x1d   :  { %s1341_s1 = scalar_lea.vmem %s61_s30, 4096  ;;  %p1346_p12 = scmp.lt.s32.totalorder %s61_s30, %s61_s30 }
  0x1e   :  { %p1342_p11 = scmp.ne.s32.totalorder %s61_s30, %s1341_s1  ;;  %p1347_p13 = scmp.lt.s32.totalorder %s1341_s1, %s1341_s1 }
  0x20   :  { %p1348_p0 = por %p1347_p13, %p1346_p12 }
  0x22   :  { %p1349_p1 = pnand %p1348_p0, %p1342_p11 }
  0x24   :  { %1352 = shalt.err (!%p1349_p1)
}
  0x25   :  { %s1500_s18 = smov 256   ;;  %s1501_s22 = smov 16  }
  0x26   :  { %66 = dma.hbm_to_vmem [thread:$0]  %s1889_s3, 4096, %s61_s30, [#allocation9], %s1500_s18, %s1500_s18, %s1501_s22  }
  0x27   :  { %s1353_s27 = scalar_lea.hbm %s1886_s0, 128 }
  0x28   :  { %p1354_p2 = scmp.ne.s32.totalorder %s1886_s0, %s1353_s27  ;;  %p1357_p3 = scmp.lt.u32.totalorder %s1353_s27, %s1886_s0 }
  0x2a   :  { %p1359_p4 = pnand %p1357_p3, %p1354_p2 }
  0x2c   :  { %1362 = shalt.err (!%p1359_p4)
}
  0x2d   :  { %s1363_s15 = scalar_lea.vmem %s30_s13, 128  ;;  %p1368_p6 = scmp.lt.s32.totalorder %s30_s13, %s30_s13 }
  0x2e   :  { %p1364_p5 = scmp.ne.s32.totalorder %s30_s13, %s1363_s15  ;;  %p1369_p7 = scmp.lt.s32.totalorder %s1363_s15, %s1363_s15 }
  0x30   :  { %p1370_p8 = por %p1369_p7, %p1368_p6 }
  0x32   :  { %p1371_p9 = pnand %p1370_p8, %p1364_p5 }
  0x34   :  { %1374 = shalt.err (!%p1371_p9)
}
  0x35   :  { %32 = dma.hbm_to_vmem [thread:$0]  %s1886_s0, 128, %s30_s13, [#allocation3]  }
  0x36   :  { %s1502_s16 = smov [#allocation7]   ;;  %s1503_s19 = smov [#allocation10]  }
  0x37   :  { %s48_s17 = sshll.u32 %s1502_s16, 4  ;;  %s76_s20 = sshll.u32 %s1503_s19, 4  ;;  %s49_s17 = int_to_ptr.vmem [resolvable:$true] %s48_s17  ;;  %s77_s20 = int_to_ptr.vmem [resolvable:$true] %s76_s20 }
  0x38   :  { %s1375_s23 = scalar_lea.hbm %s1888_s2, 4096 }
  0x39   :  { %p1376_p10 = scmp.ne.s32.totalorder %s1888_s2, %s1375_s23  ;;  %p1379_p11 = scmp.lt.u32.totalorder %s1375_s23, %s1888_s2 }
  0x3b   :  { %p1381_p12 = pnand %p1379_p11, %p1376_p10 }
  0x3d   :  { %1384 = shalt.err (!%p1381_p12)
}
  0x3e   :  { %s1385_s0 = scalar_lea.vmem %s49_s17, 4096  ;;  %p1390_p0 = scmp.lt.s32.totalorder %s49_s17, %s49_s17 }
  0x3f   :  { %p1386_p13 = scmp.ne.s32.totalorder %s49_s17, %s1385_s0  ;;  %p1391_p1 = scmp.lt.s32.totalorder %s1385_s0, %s1385_s0 }
  0x41   :  { %p1392_p2 = por %p1391_p1, %p1390_p0 }
  0x43   :  { %p1393_p3 = pnand %p1392_p2, %p1386_p13 }
  0x45   :  { %1396 = shalt.err (!%p1393_p3)
}
  0x46   :  { %54 = dma.hbm_to_vmem [thread:$0]  %s1888_s2, 4096, %s49_s17, [#allocation6], %s1500_s18, %s1500_s18, %s1501_s22  }
  0x47   :  { %s1397_s14 = scalar_lea.hbm %s1892_s6, 4096 }
  0x48   :  { %p1398_p4 = scmp.ne.s32.totalorder %s1892_s6, %s1397_s14  ;;  %p1401_p5 = scmp.lt.u32.totalorder %s1397_s14, %s1892_s6 }
  0x4a   :  { %p1403_p6 = pnand %p1401_p5, %p1398_p4 }
  0x4c   :  { %1406 = shalt.err (!%p1403_p6)
}
  0x4d   :  { %s1407_s19 = scalar_lea.vmem %s77_s20, 4096  ;;  %p1412_p8 = scmp.lt.s32.totalorder %s77_s20, %s77_s20 }
  0x4e   :  { %p1408_p7 = scmp.ne.s32.totalorder %s77_s20, %s1407_s19  ;;  %p1413_p9 = scmp.lt.s32.totalorder %s1407_s19, %s1407_s19 }
  0x50   :  { %p1414_p10 = por %p1413_p9, %p1412_p8 }
  0x52   :  { %p1415_p11 = pnand %p1414_p10, %p1408_p7 }
  0x54   :  { %1418 = shalt.err (!%p1415_p11)
}
  0x55   :  { %s1504_s2 = smov 128   ;;  %s1505_s18 = smov 8  }
  0x56   :  { %82 = dma.hbm_to_vmem [thread:$0]  %s1892_s6, 4096, %s77_s20, [#allocation9], %s1504_s2, %s1504_s2, %s1505_s18  }
  0x57   :  { %s1506_s21 = smov [#allocation11]   ;;  %s1419_s25 = scalar_lea.hbm %s1893_s7, 4096 }
  0x58   :  { %s88_s1 = sshll.u32 %s1506_s21, 4  ;;  %p1420_p12 = scmp.ne.s32.totalorder %s1893_s7, %s1419_s25  ;;  %s89_s1 = int_to_ptr.vmem [resolvable:$true] %s88_s1 }
  0x59   :  { %p1423_p13 = scmp.lt.u32.totalorder %s1419_s25, %s1893_s7 }
  0x5b   :  { %p1425_p0 = pnand %p1423_p13, %p1420_p12 }
  0x5d   :  { %1428 = shalt.err (!%p1425_p0)
}
  0x5e   :  { %s1429_s28 = scalar_lea.vmem %s89_s1, 4096  ;;  %p1434_p2 = scmp.lt.s32.totalorder %s89_s1, %s89_s1 }
  0x5f   :  { %p1430_p1 = scmp.ne.s32.totalorder %s89_s1, %s1429_s28  ;;  %p1435_p3 = scmp.lt.s32.totalorder %s1429_s28, %s1429_s28 }
  0x61   :  { %p1436_p4 = por %p1435_p3, %p1434_p2 }
  0x63   :  { %p1437_p5 = pnand %p1436_p4, %p1430_p1 }
  0x65   :  { %1440 = shalt.err (!%p1437_p5)
}
  0x66   :  { %94 = dma.hbm_to_vmem [thread:$0]  %s1893_s7, 4096, %s89_s1, [#allocation12], %s1504_s2, %s1504_s2, %s1505_s18  }
  0x67   :  { %1485 = dma.done.wait [#allocation3], 128  }
  0x68   :  { %1486 = vsyncadd [#allocation3], 4294967168 }
  0x69   :  { %1487 = dma.done.wait [#allocation6], 4224  }
  0x6a   :  { %1488 = vsyncadd [#allocation6], 4294963072 }
  0x6b   :  { %1489 = dma.done.wait [#allocation9], 8192  }
  0x6c   :  { %1490 = vsyncadd [#allocation9], 4294959104 }
  0x6d   :  { %1491 = dma.done.wait [#allocation12], 4096  }
  0x6e   :  { %1492 = vsyncadd [#allocation12], 4294963200  ;;  %v1507_v0 = vmov 0.0   ;;  %v120_v1 = vld [vmem:[#allocation7 + $0x8] sm:$0xff]  ;;  %v122_v2 = vld [vmem:[#allocation7 + $0x18] sm:$0xff]  ;;  %s1508_s15 = smov [#allocation13]  }
  0x6f   :  { %247 = vmatprep.mubr.f32.mxu0 %v1507_v0  ;;  %318 = vmatprep.mubr.f32.mxu1 %v1507_v0  ;;  %v152_v3 = vld [vmem:[#allocation8 + $0x8] sm:$0xff]  ;;  %v1650_v4 = vpack.c.bf16 %v122_v2, %v120_v1  ;;  %v154_v5 = vld [vmem:[#allocation8 + $0x18] sm:$0xff]  ;;  %v119_v6 = vld [vmem:[#allocation7] sm:$0xff]  ;;  %s870_s3 = sshll.u32 %s1508_s15, 4  ;;  %s871_s3 = int_to_ptr.vmem [resolvable:$true] %s870_s3 }
  0x70   :  { %v121_v7 = vld [vmem:[#allocation7 + $0x10] sm:$0xff]  ;;  %v1652_v8 = vpack.c.bf16 %v154_v5, %v152_v3  ;;  %v151_v10 = vld [vmem:[#allocation8] sm:$0xff]  ;;  %v124_v12 = vld [vmem:[#allocation7 + $0x28] sm:$0xff]  ;;  %s1441_s30 = scalar_lea.vmem %s871_s3, 128  ;;  %p1446_p7 = scmp.lt.s32.totalorder %s871_s3, %s871_s3 }
  0x71   :  { %v1654_v9 = vpack.c.bf16 %v121_v7, %v119_v6  ;;  %v153_v11 = vld [vmem:[#allocation8 + $0x10] sm:$0xff]  ;;  %1039 = vmatprep.subr.bf16.mxu0 %v1650_v4  ;;  %v126_v14 = vld [vmem:[#allocation7 + $0x38] sm:$0xff]  ;;  %v156_v15 = vld [vmem:[#allocation8 + $0x28] sm:$0xff]  ;;  %p1442_p6 = scmp.ne.s32.totalorder %s871_s3, %s1441_s30  ;;  %p1447_p8 = scmp.lt.s32.totalorder %s1441_s30, %s1441_s30 }
  0x72   :  { %v1657_v13 = vpack.c.bf16 %v153_v11, %v151_v10  ;;  %v158_v16 = vld [vmem:[#allocation8 + $0x38] sm:$0xff]  ;;  %1071 = vmatprep.subr.bf16.mxu1 %v1652_v8  ;;  %v1661_v17 = vpack.c.bf16 %v126_v14, %v124_v12  ;;  %v123_v19 = vld [vmem:[#allocation7 + $0x20] sm:$0xff]  ;;  %v125_v20 = vld [vmem:[#allocation7 + $0x30] sm:$0xff] }
  0x73   :  { %1041 = vmatpush1.bf16.msra.mxu0 %v1654_v9  ;;  %v1663_v18 = vpack.c.bf16 %v158_v16, %v156_v15  ;;  %v155_v21 = vld [vmem:[#allocation8 + $0x20] sm:$0xff]  ;;  %v1666_v22 = vpack.c.bf16 %v125_v20, %v123_v19  ;;  %v157_v23 = vld [vmem:[#allocation8 + $0x30] sm:$0xff]  ;;  %v128_v24 = vld [vmem:[#allocation7 + $0x48] sm:$0xff]  ;;  %p1448_p9 = por %p1447_p8, %p1446_p7 }
  0x74   :  { %1073 = vmatpush1.bf16.msra.mxu1 %v1657_v13  ;;  %v130_v25 = vld [vmem:[#allocation7 + $0x58] sm:$0xff]  ;;  %1043 = vmatprep.subr.bf16.mxu0 %v1661_v17  ;;  %v1670_v26 = vpack.c.bf16 %v157_v23, %v155_v21  ;;  %v160_v28 = vld [vmem:[#allocation8 + $0x48] sm:$0xff]  ;;  %v127_v30 = vld [vmem:[#allocation7 + $0x40] sm:$0xff] }
  0x75   :  { %1075 = vmatprep.subr.bf16.mxu1 %v1663_v18  ;;  %v1672_v27 = vpack.c.bf16 %v130_v25, %v128_v24  ;;  %v162_v29 = vld [vmem:[#allocation8 + $0x58] sm:$0xff]  ;;  %v129_v32 = vld [vmem:[#allocation7 + $0x50] sm:$0xff]  ;;  %v159_v33 = vld [vmem:[#allocation8 + $0x40] sm:$0xff]  ;;  %p1449_p10 = pnand %p1448_p9, %p1442_p6 }
  0x76   :  { %v1674_v31 = vpack.c.bf16 %v162_v29, %v160_v28  ;;  %v161_v34 = vld [vmem:[#allocation8 + $0x50] sm:$0xff]  ;;  %v1677_v35 = vpack.c.bf16 %v129_v32, %v127_v30  ;;  %v132_v36 = vld [vmem:[#allocation7 + $0x68] sm:$0xff]  ;;  %v134_v37 = vld [vmem:[#allocation7 + $0x78] sm:$0xff] }
  0x77   :  { %1045 = vmatpush1.bf16.msra.mxu0 %v1666_v22  ;;  %v164_v38 = vld [vmem:[#allocation8 + $0x68] sm:$0xff]  ;;  %v1681_v39 = vpack.c.bf16 %v161_v34, %v159_v33  ;;  %v1683_v40 = vpack.c.bf16 %v134_v37, %v132_v36  ;;  %v166_v41 = vld [vmem:[#allocation8 + $0x78] sm:$0xff]  ;;  %v131_v42 = vld [vmem:[#allocation7 + $0x60] sm:$0xff] }
  0x78   :  { %1077 = vmatpush1.bf16.msra.mxu1 %v1670_v26  ;;  %1047 = vmatprep.subr.bf16.mxu0 %v1672_v27  ;;  %v133_v43 = vld [vmem:[#allocation7 + $0x70] sm:$0xff]  ;;  %v1686_v44 = vpack.c.bf16 %v166_v41, %v164_v38  ;;  %v163_v45 = vld [vmem:[#allocation8 + $0x60] sm:$0xff]  ;;  %v136_v47 = vld [vmem:[#allocation7 + $0x88] sm:$0xff] }
  0x79   :  { %1079 = vmatprep.subr.bf16.mxu1 %v1674_v31  ;;  %v165_v46 = vld [vmem:[#allocation8 + $0x70] sm:$0xff]  ;;  %v138_v48 = vld [vmem:[#allocation7 + $0x98] sm:$0xff]  ;;  %v168_v49 = vld [vmem:[#allocation8 + $0x88] sm:$0xff]  ;;  %v1689_v51 = vpack.c.bf16 %v133_v43, %v131_v42 }
  0x7a   :  { %v170_v50 = vld [vmem:[#allocation8 + $0x98] sm:$0xff]  ;;  %v1693_v52 = vpack.c.bf16 %v165_v46, %v163_v45  ;;  %v1695_v53 = vpack.c.bf16 %v138_v48, %v136_v47  ;;  %v135_v54 = vld [vmem:[#allocation7 + $0x80] sm:$0xff]  ;;  %v137_v55 = vld [vmem:[#allocation7 + $0x90] sm:$0xff] }
  0x7b   :  { %1049 = vmatpush1.bf16.msra.mxu0 %v1677_v35  ;;  %v167_v56 = vld [vmem:[#allocation8 + $0x80] sm:$0xff]  ;;  %v1698_v57 = vpack.c.bf16 %v170_v50, %v168_v49  ;;  %v169_v58 = vld [vmem:[#allocation8 + $0x90] sm:$0xff]  ;;  %v140_v59 = vld [vmem:[#allocation7 + $0xa8] sm:$0xff]  ;;  %v1701_v63 = vpack.c.bf16 %v137_v55, %v135_v54 }
  0x7c   :  { %1081 = vmatpush1.bf16.msra.mxu1 %v1681_v39  ;;  %1051 = vmatprep.subr.bf16.mxu0 %v1683_v40  ;;  %v142_v60 = vld [vmem:[#allocation7 + $0xb8] sm:$0xff]  ;;  %v172_v61 = vld [vmem:[#allocation8 + $0xa8] sm:$0xff]  ;;  %v1705_v1 = vpack.c.bf16 %v169_v58, %v167_v56  ;;  %v139_v3 = vld [vmem:[#allocation7 + $0xa0] sm:$0xff] }
  0x7d   :  { %1083 = vmatprep.subr.bf16.mxu1 %v1686_v44  ;;  %v174_v62 = vld [vmem:[#allocation8 + $0xb8] sm:$0xff]  ;;  %v1707_v2 = vpack.c.bf16 %v142_v60, %v140_v59  ;;  %v141_v5 = vld [vmem:[#allocation7 + $0xb0] sm:$0xff]  ;;  %v171_v6 = vld [vmem:[#allocation8 + $0xa0] sm:$0xff] }
  0x7e   :  { %v1710_v7 = vpack.c.bf16 %v174_v62, %v172_v61  ;;  %v173_v10 = vld [vmem:[#allocation8 + $0xb0] sm:$0xff]  ;;  %v144_v11 = vld [vmem:[#allocation7 + $0xc8] sm:$0xff]  ;;  %v146_v12 = vld [vmem:[#allocation7 + $0xd8] sm:$0xff]  ;;  %v1713_v16 = vpack.c.bf16 %v141_v5, %v139_v3 }
  0x7f   :  { %1053 = vmatpush1.bf16.msra.mxu0 %v1689_v51  ;;  %v176_v14 = vld [vmem:[#allocation8 + $0xc8] sm:$0xff]  ;;  %v178_v15 = vld [vmem:[#allocation8 + $0xd8] sm:$0xff]  ;;  %v1717_v19 = vpack.c.bf16 %v173_v10, %v171_v6  ;;  %v1719_v20 = vpack.c.bf16 %v146_v12, %v144_v11  ;;  %v143_v21 = vld [vmem:[#allocation7 + $0xc0] sm:$0xff] }
  0x80   :  { %1085 = vmatpush1.bf16.msra.mxu1 %v1693_v52  ;;  %1055 = vmatprep.subr.bf16.mxu0 %v1695_v53  ;;  %v145_v23 = vld [vmem:[#allocation7 + $0xd0] sm:$0xff]  ;;  %v175_v24 = vld [vmem:[#allocation8 + $0xc0] sm:$0xff]  ;;  %v1722_v25 = vpack.c.bf16 %v178_v15, %v176_v14  ;;  %v148_v29 = vld [vmem:[#allocation7 + $0xe8] sm:$0xff] }
  0x81   :  { %1087 = vmatprep.subr.bf16.mxu1 %v1698_v57  ;;  %v177_v28 = vld [vmem:[#allocation8 + $0xd0] sm:$0xff]  ;;  %v150_v30 = vld [vmem:[#allocation7 + $0xf8] sm:$0xff]  ;;  %v180_v32 = vld [vmem:[#allocation8 + $0xe8] sm:$0xff]  ;;  %v1725_v34 = vpack.c.bf16 %v145_v23, %v143_v21 }
  0x82   :  { %v182_v33 = vld [vmem:[#allocation8 + $0xf8] sm:$0xff]  ;;  %v1729_v36 = vpack.c.bf16 %v177_v28, %v175_v24  ;;  %v1731_v37 = vpack.c.bf16 %v150_v30, %v148_v29  ;;  %v147_v38 = vld [vmem:[#allocation7 + $0xe0] sm:$0xff]  ;;  %v149_v41 = vld [vmem:[#allocation7 + $0xf0] sm:$0xff] }
  0x83   :  { %1057 = vmatpush1.bf16.msra.mxu0 %v1701_v63  ;;  %v1734_v42 = vpack.c.bf16 %v182_v33, %v180_v32  ;;  %v179_v43 = vld [vmem:[#allocation8 + $0xe0] sm:$0xff]  ;;  %v181_v45 = vld [vmem:[#allocation8 + $0xf0] sm:$0xff]  ;;  %v518_v47 = vld [vmem:[#allocation10 + $0x88] sm:$0xff]  ;;  %v1737_v48 = vpack.c.bf16 %v149_v41, %v147_v38 }
  0x84   :  { %1089 = vmatpush1.bf16.msra.mxu1 %v1705_v1  ;;  %1059 = vmatprep.subr.bf16.mxu0 %v1707_v2  ;;  %v517_v46 = vld [vmem:[#allocation10 + $0x80] sm:$0xff]  ;;  %v1741_v49 = vpack.c.bf16 %v181_v45, %v179_v43  ;;  %v502_v55 = vld [vmem:[#allocation10 + $0x8] sm:$0xff]  ;;  %v1747_v56 = vld [vmem:[#allocation2] sm:$0xff] }
  0x85   :  { %1091 = vmatprep.subr.bf16.mxu1 %v1710_v7  ;;  %v1744_v50 = vpack.c.bf16 %v518_v47, %v517_v46  ;;  %v501_v54 = vld [vmem:[#allocation10] sm:$0xff]  ;;  %v519_v58 = vld [vmem:[#allocation10 + $0x90] sm:$0xff]  ;;  %v520_v59 = vld [vmem:[#allocation10 + $0x98] sm:$0xff] }
  0x86   :  { %v118_v60 = vld [vmem:[#allocation5] sm:$0xff]  ;;  %v1752_v61 = vpack.c.bf16 %v502_v55, %v501_v54  ;;  %v1755_v62 = vpack.c.bf16 %v520_v59, %v519_v58  ;;  %v503_v3 = vld [vmem:[#allocation10 + $0x10] sm:$0xff]  ;;  %v521_v6 = vld [vmem:[#allocation10 + $0xa0] sm:$0xff] }
  0x87   :  { %1061 = vmatpush1.bf16.msra.mxu0 %v1713_v16  ;;  %v504_v5 = vld [vmem:[#allocation10 + $0x18] sm:$0xff]  ;;  %v522_v10 = vld [vmem:[#allocation10 + $0xa8] sm:$0xff]  ;;  %v505_v12 = vld [vmem:[#allocation10 + $0x20] sm:$0xff] }
  0x88   :  { %1093 = vmatpush1.bf16.msra.mxu1 %v1717_v19  ;;  %1063 = vmatprep.subr.bf16.mxu0 %v1719_v20  ;;  %v1764_v11 = vpack.c.bf16 %v522_v10, %v521_v6  ;;  %v506_v14 = vld [vmem:[#allocation10 + $0x28] sm:$0xff]  ;;  %v523_v15 = vld [vmem:[#allocation10 + $0xb0] sm:$0xff]  ;;  %v508_v24 = vld [vmem:[#allocation10 + $0x38] sm:$0xff] }
  0x89   :  { %1095 = vmatprep.subr.bf16.mxu1 %v1722_v25  ;;  %v507_v23 = vld [vmem:[#allocation10 + $0x30] sm:$0xff]  ;;  %v525_v28 = vld [vmem:[#allocation10 + $0xc0] sm:$0xff]  ;;  %v526_v29 = vld [vmem:[#allocation10 + $0xc8] sm:$0xff] }
  0x8a   :  { %v1182_v30 = vpack.c.bf16 %v526_v29, %v525_v28  ;;  %v509_v32 = vld [vmem:[#allocation10 + $0x40] sm:$0xff]  ;;  %v527_v33 = vld [vmem:[#allocation10 + $0xd0] sm:$0xff]  ;;  %v528_v38 = vld [vmem:[#allocation10 + $0xd8] sm:$0xff] }
  0x8b   :  { %1065 = vmatpush1.bf16.msra.mxu0 %v1725_v34  ;;  %v511_v43 = vld [vmem:[#allocation10 + $0x50] sm:$0xff]  ;;  %v512_v45 = vld [vmem:[#allocation10 + $0x58] sm:$0xff]  ;;  %v533_v54 = vld [vmem:[#allocation11] sm:$0xff] }
  0x8c   :  { %1097 = vmatpush1.bf16.msra.mxu1 %v1729_v36  ;;  %1067 = vmatprep.subr.bf16.mxu0 %v1731_v37  ;;  %v534_v55 = vld [vmem:[#allocation11 + $0x8] sm:$0xff]  ;;  %v551_v58 = vld [vmem:[#allocation11 + $0x90] sm:$0xff]  ;;  %v552_v59 = vld [vmem:[#allocation11 + $0x98] sm:$0xff] }
  0x8d   :  { %1099 = vmatprep.subr.bf16.mxu1 %v1734_v42  ;;  %v536_v6 = vld [vmem:[#allocation11 + $0x18] sm:$0xff]  ;;  %v553_v10 = vld [vmem:[#allocation11 + $0xa0] sm:$0xff] }
  0x8e   :  { %v540_v28 = vld [vmem:[#allocation11 + $0x38] sm:$0xff]  ;;  %v557_v29 = vld [vmem:[#allocation11 + $0xc0] sm:$0xff] }
  0x8f   :  { %1069 = vmatpush1.bf16.msra.mxu0 %v1737_v48 }
  0x90   :  { %1101 = vmatpush1.bf16.msra.mxu1 %v1741_v49  ;;  %1103 = vmatprep.subr.bf16.mxu0 %v1650_v4  ;;  %v1761_v4 = vpack.c.bf16 %v504_v5, %v503_v3  ;;  %v1826_v3 = vpack.c.bf16 %v552_v59, %v551_v58  ;;  %v535_v5 = vld [vmem:[#allocation11 + $0x10] sm:$0xff] }
  0x91   :  { %1167 = vmatprep.subr.bf16.mxu1 %v1744_v50  ;;  %v896_v58 = vld [vmem:[%s1894_s8] ss:$0 sm:$0xff] }
  0x92   :  { %248 = vmatmul.mubr.f32.vlgmr.msra.gmra.mrb[0].mxu0 %v1747_v56 }
  0x93   :  { %319 = vmatmul.mubr.f32.vlgmr.msra.gmra.mrb[0].mxu1 %v118_v60  ;;  %1105 = vmatpush1.bf16.msra.mxu0 %v1654_v9  ;;  %v524_v9 = vld [vmem:[#allocation10 + $0xb8] sm:$0xff] }
  0x94   :  { %1107 = vmatprep.subr.bf16.mxu0 %v1661_v17  ;;  %405 = vmatprep.mubr.f32.mxu0 %v1507_v0  ;;  %v1176_v17 = vpack.c.bf16 %v506_v14, %v505_v12  ;;  %v1178_v21 = vpack.c.bf16 %v524_v9, %v523_v15  ;;  %v537_v14 = vld [vmem:[#allocation11 + $0x20] sm:$0xff]  ;;  %v538_v15 = vld [vmem:[#allocation11 + $0x28] sm:$0xff]  ;;  %v555_v9 = vld [vmem:[#allocation11 + $0xb0] sm:$0xff] }
  0x95   :  { %1169 = vmatpush3.bf16.msra.mxu1 %v1752_v61 }
  0x96   :  { %1171 = vmatprep.subr.bf16.mxu1 %v1755_v62 }
  0x97   :  { %1109 = vmatpush1.bf16.msra.mxu0 %v1666_v22  ;;  %v1180_v22 = vpack.c.bf16 %v508_v24, %v507_v23  ;;  %v539_v24 = vld [vmem:[#allocation11 + $0x30] sm:$0xff] }
  0x98   :  { %1111 = vmatprep.subr.bf16.mxu0 %v1672_v27  ;;  %v510_v27 = vld [vmem:[#allocation10 + $0x48] sm:$0xff] }
  0x99   :  { %1173 = vmatpush3.bf16.msra.mxu1 %v1761_v4  ;;  %v1184_v41 = vpack.c.bf16 %v510_v27, %v509_v32  ;;  %v541_v27 = vld [vmem:[#allocation11 + $0x40] sm:$0xff] }
  0x9a   :  { %1175 = vmatprep.subr.bf16.mxu1 %v1764_v11 }
  0x9b   :  { %1113 = vmatpush1.bf16.msra.mxu0 %v1677_v35  ;;  %v1186_v35 = vpack.c.bf16 %v528_v38, %v527_v33  ;;  %v542_v33 = vld [vmem:[#allocation11 + $0x48] sm:$0xff]  ;;  %v559_v38 = vld [vmem:[#allocation11 + $0xd0] sm:$0xff] }
  0x9c   :  { %1115 = vmatprep.subr.bf16.mxu0 %v1683_v40  ;;  %v1188_v40 = vpack.c.bf16 %v512_v45, %v511_v43  ;;  %v543_v45 = vld [vmem:[#allocation11 + $0x50] sm:$0xff] }
  0x9d   :  { %1177 = vmatpush3.bf16.msra.mxu1 %v1176_v17 }
  0x9e   :  { %1179 = vmatprep.subr.bf16.mxu1 %v1178_v21 }
  0x9f   :  { %1117 = vmatpush1.bf16.msra.mxu0 %v1689_v51 }
  0xa0   :  { %1119 = vmatprep.subr.bf16.mxu0 %v1695_v53  ;;  %v516_v53 = vld [vmem:[#allocation10 + $0x78] sm:$0xff] }
  0xa1   :  { %1181 = vmatpush3.bf16.msra.mxu1 %v1180_v22 }
  0xa2   :  { %1183 = vmatprep.subr.bf16.mxu1 %v1182_v30 }
  0xa3   :  { %1121 = vmatpush1.bf16.msra.mxu0 %v1701_v63  ;;  %v549_v63 = vld [vmem:[#allocation11 + $0x80] sm:$0xff] }
  0xa4   :  { %1123 = vmatprep.subr.bf16.mxu0 %v1707_v2 }
  0xa5   :  { %1185 = vmatpush3.bf16.msra.mxu1 %v1184_v41 }
  0xa6   :  { %1187 = vmatprep.subr.bf16.mxu1 %v1186_v35 }
  0xa7   :  { %1125 = vmatpush1.bf16.msra.mxu0 %v1713_v16 }
  0xa8   :  { %1127 = vmatprep.subr.bf16.mxu0 %v1719_v20  ;;  %v327_v20 = vld [vmem:[%s1890_s4] sm:$0x3] }
  0xa9   :  { %1189 = vmatpush3.bf16.msra.mxu1 %v1188_v40 }
  0xab   :  { %1129 = vmatpush1.bf16.msra.mxu0 %v1725_v34 }
  0xac   :  { %1131 = vmatprep.subr.bf16.mxu0 %v1731_v37 }
  0xaf   :  { %1133 = vmatpush1.bf16.msra.mxu0 %v1737_v48 }
  0xb0   :  { %1135 = vmatprep.subr.bf16.mxu0 %v1652_v8  ;;  %v530_v8 = vld [vmem:[#allocation10 + $0xe8] sm:$0xff] }
  0xb2   :  { %406 = vmatmul.mubr.f32.vlgmr.msra.gmra.mrb[2].mxu0 %v118_v60 }
  0xb3   :  { %1137 = vmatpush1.bf16.msra.mxu0 %v1657_v13  ;;  %476 = vmatprep.mubr.f32.mxu0 %v1507_v0  ;;  %v529_v0 = vld [vmem:[#allocation10 + $0xe0] sm:$0xff] }
  0xb4   :  { %1139 = vmatprep.subr.bf16.mxu0 %v1663_v18  ;;  %v1190_v13 = vpack.c.bf16 %v530_v8, %v529_v0  ;;  %v513_v18 = vld [vmem:[#allocation10 + $0x60] sm:$0xff]  ;;  %v562_v8 = vld [vmem:[#allocation11 + $0xe8] sm:$0xff] }
  0xb5   :  { %v561_v0 = vld [vmem:[#allocation11 + $0xe0] sm:$0xff] }
  0xb6   :  { %1191 = vmatprep.subr.bf16.mxu1 %v1190_v13 }
  0xb7   :  { %1141 = vmatpush1.bf16.msra.mxu0 %v1670_v26  ;;  %v514_v26 = vld [vmem:[#allocation10 + $0x68] sm:$0xff] }
  0xb8   :  { %1143 = vmatprep.subr.bf16.mxu0 %v1674_v31  ;;  %v1192_v31 = vpack.c.bf16 %v514_v26, %v513_v18  ;;  %v1222_v18 = vpack.c.bf16 %v562_v8, %v561_v0  ;;  %v545_v26 = vld [vmem:[#allocation11 + $0x60] sm:$0xff] }
  0xba   :  { %1193 = vmatpush3.bf16.msra.mxu1 %v1192_v31 }
  0xbb   :  { %1145 = vmatpush1.bf16.msra.mxu0 %v1681_v39  ;;  %v531_v39 = vld [vmem:[#allocation10 + $0xf0] sm:$0xff] }
  0xbc   :  { %1147 = vmatprep.subr.bf16.mxu0 %v1686_v44  ;;  %v532_v44 = vld [vmem:[#allocation10 + $0xf8] sm:$0xff] }
  0xbd   :  { %v1194_v51 = vpack.c.bf16 %v532_v44, %v531_v39  ;;  %v563_v39 = vld [vmem:[#allocation11 + $0xf0] sm:$0xff]  ;;  %v564_v44 = vld [vmem:[#allocation11 + $0xf8] sm:$0xff] }
  0xbf   :  { %1149 = vmatpush1.bf16.msra.mxu0 %v1693_v52  ;;  %v515_v52 = vld [vmem:[#allocation10 + $0x70] sm:$0xff]  ;;  %1195 = vmatprep.subr.bf16.mxu1 %v1194_v51 }
  0xc0   :  { %1151 = vmatprep.subr.bf16.mxu0 %v1698_v57  ;;  %v1196_v57 = vpack.c.bf16 %v516_v53, %v515_v52  ;;  %v1226_v52 = vpack.c.bf16 %v564_v44, %v563_v39  ;;  %v547_v53 = vld [vmem:[#allocation11 + $0x70] sm:$0xff] }
  0xc2   :  { %1197 = vmatpush3.bf16.msra.mxu1 %v1196_v57 }
  0xc3   :  { %1153 = vmatpush1.bf16.msra.mxu0 %v1705_v1  ;;  %v550_v1 = vld [vmem:[#allocation11 + $0x88] sm:$0xff] }
  0xc4   :  { %1155 = vmatprep.subr.bf16.mxu0 %v1710_v7  ;;  %v1804_v2 = vpack.c.bf16 %v550_v1, %v549_v63  ;;  %v329_v7 = vlaneseq  ;;  %v483_v1 = vld [vmem:[%s1891_s5] sm:$0x3] }
  0xc6   :  { %1199 = vmatprep.subr.bf16.mxu1 %v1804_v2  ;;  %v1807_v16 = vshrl.u32 %v329_v7, 7 }
  0xc7   :  { %1157 = vmatpush1.bf16.msra.mxu0 %v1717_v19 }
  0xc8   :  { %1159 = vmatprep.subr.bf16.mxu0 %v1722_v25  ;;  %v331_v19 = vsub.s32 0, %v1807_v16  ;;  %v335_v25 = vsub.s32 1, %v1807_v16 }
  0xca   :  { %v336_v46 = vrot.slane %v327_v20, %v335_v25  ;;  %v488_v7 = vrot.slane %v483_v1, %v331_v19 }
  0xcb   :  { %1161 = vmatpush1.bf16.msra.mxu0 %v1729_v36  ;;  %v332_v36 = vrot.slane %v327_v20, %v331_v19  ;;  %v492_v20 = vrot.slane %v483_v1, %v335_v25 }
  0xcc   :  { %1163 = vmatprep.subr.bf16.mxu0 %v1734_v42 }
  0xcf   :  { %1165 = vmatpush1.bf16.msra.mxu0 %v1741_v49 }
  0xd0   :  { %1231 = vmatprep.subr.bf16.mxu0 %v1744_v50 }
  0xd2   :  { %477 = vmatmul.mubr.f32.vlgmr.msra.gmra.mrb[2].mxu0 %v1747_v56 }
  0xd3   :  { %1233 = vmatpush3.bf16.msra.mxu0 %v1752_v61 }
  0xd4   :  { %1235 = vmatprep.subr.bf16.mxu0 %v1755_v62  ;;  %v1824_v62 = vpack.c.bf16 %v534_v55, %v533_v54 }
  0xd7   :  { %1237 = vmatpush3.bf16.msra.mxu0 %v1761_v4  ;;  %v554_v4 = vld [vmem:[#allocation11 + $0xa8] sm:$0xff] }
  0xd8   :  { %1239 = vmatprep.subr.bf16.mxu0 %v1764_v11  ;;  %v1833_v11 = vpack.c.bf16 %v536_v6, %v535_v5  ;;  %v1836_v12 = vpack.c.bf16 %v554_v4, %v553_v10 }
  0xdb   :  { %1241 = vmatpush3.bf16.msra.mxu0 %v1176_v17  ;;  %v556_v17 = vld [vmem:[#allocation11 + $0xb8] sm:$0xff] }
  0xdc   :  { %1243 = vmatprep.subr.bf16.mxu0 %v1178_v21  ;;  %v1208_v21 = vpack.c.bf16 %v538_v15, %v537_v14  ;;  %v1210_v23 = vpack.c.bf16 %v556_v17, %v555_v9 }
  0xdf   :  { %1245 = vmatpush3.bf16.msra.mxu0 %v1180_v22  ;;  %v558_v22 = vld [vmem:[#allocation11 + $0xc8] sm:$0xff] }
  0xe0   :  { %1247 = vmatprep.subr.bf16.mxu0 %v1182_v30  ;;  %v1212_v30 = vpack.c.bf16 %v540_v28, %v539_v24  ;;  %v1214_v32 = vpack.c.bf16 %v558_v22, %v557_v29 }
  0xe3   :  { %1249 = vmatpush3.bf16.msra.mxu0 %v1184_v41  ;;  %v560_v41 = vld [vmem:[#allocation11 + $0xd8] sm:$0xff] }
  0xe4   :  { %1251 = vmatprep.subr.bf16.mxu0 %v1186_v35  ;;  %v1216_v35 = vpack.c.bf16 %v542_v33, %v541_v27  ;;  %v1218_v43 = vpack.c.bf16 %v560_v41, %v559_v38 }
  0xe7   :  { %1253 = vmatpush3.bf16.msra.mxu0 %v1188_v40  ;;  %v544_v40 = vld [vmem:[#allocation11 + $0x58] sm:$0xff] }
  0xe8   :  { %1255 = vmatprep.subr.bf16.mxu0 %v1190_v13  ;;  %v1220_v13 = vpack.c.bf16 %v544_v40, %v543_v45 }
  0xeb   :  { %1257 = vmatpush3.bf16.msra.mxu0 %v1192_v31  ;;  %v546_v31 = vld [vmem:[#allocation11 + $0x68] sm:$0xff] }
  0xec   :  { %1259 = vmatprep.subr.bf16.mxu0 %v1194_v51  ;;  %v1224_v51 = vpack.c.bf16 %v546_v31, %v545_v26 }
  0xef   :  { %1261 = vmatpush3.bf16.msra.mxu0 %v1196_v57  ;;  %v548_v57 = vld [vmem:[#allocation11 + $0x78] sm:$0xff] }
  0xf0   :  { %v1228_v63 = vpack.c.bf16 %v548_v57, %v547_v53 }
 0x165   :  { %v249_v34 = vpop.f32.mrb[0].mxu0 }
 0x166   :  { %v320_v37 = vpop.f32.mrb[0].mxu1  ;;  %v251_v42 = vpop.f32.mrb[1].mxu0 }
 0x167   :  { %v325_v47 = vsub.f32 %v249_v34, %v320_v37  ;;  %v322_v48 = vpop.f32.mrb[1].mxu1 }
 0x168   :  { %v326_v49 = vsub.f32 %v251_v42, %v322_v48 }
 0x169   :  { %v1818_v50 = vadd.f32 %v332_v36, %v325_v47 }
 0x16a   :  { %v1820_v56 = vadd.f32 %v336_v46, %v326_v49 }
 0x16b   :  { %v497_v60 = vmax.f32 %v1818_v50, 0.0 }
 0x16c   :  { %v498_v61 = vmax.f32 %v1820_v56, 0.0 }
 0x16e   :  { %629 = vmatprep.mubr.f32.mxu1 %v498_v61 }
 0x16f   :  { %630 = vmatmul.mubr.f32.vlgmr.msra.gmra.mrb[2].mxu1 %v497_v60 }
 0x170   :  { %1201 = vmatpush3.bf16.msra.mxu1 %v1824_v62 }
 0x171   :  { %1203 = vmatprep.subr.bf16.mxu1 %v1826_v3 }
 0x174   :  { %1205 = vmatpush3.bf16.msra.mxu1 %v1833_v11 }
 0x175   :  { %1207 = vmatprep.subr.bf16.mxu1 %v1836_v12 }
 0x178   :  { %1209 = vmatpush3.bf16.msra.mxu1 %v1208_v21 }
 0x179   :  { %1211 = vmatprep.subr.bf16.mxu1 %v1210_v23 }
 0x17c   :  { %1213 = vmatpush3.bf16.msra.mxu1 %v1212_v30 }
 0x17d   :  { %1215 = vmatprep.subr.bf16.mxu1 %v1214_v32 }
 0x180   :  { %1217 = vmatpush3.bf16.msra.mxu1 %v1216_v35 }
 0x181   :  { %1219 = vmatprep.subr.bf16.mxu1 %v1218_v43 }
 0x184   :  { %1221 = vmatpush3.bf16.msra.mxu1 %v1220_v13 }
 0x185   :  { %1223 = vmatprep.subr.bf16.mxu1 %v1222_v18 }
 0x188   :  { %1225 = vmatpush3.bf16.msra.mxu1 %v1224_v51 }
 0x189   :  { %1227 = vmatprep.subr.bf16.mxu1 %v1226_v52 }
 0x18c   :  { %1229 = vmatpush3.bf16.msra.mxu1 %v1228_v63 }
 0x18d   :  { %1263 = vmatprep.subr.bf16.mxu1 %v1804_v2 }
 0x1a5   :  { %v478_v34 = vpop.f32.mrb[2].mxu0 }
 0x1a6   :  { %v495_v36 = vadd.f32 %v488_v7, %v478_v34  ;;  %v480_v37 = vpop.f32.mrb[3].mxu0 }
 0x1a7   :  { %v496_v42 = vadd.f32 %v492_v20, %v480_v37 }
 0x1a8   :  { %v499_v47 = vmax.f32 %v495_v36, 0.0 }
 0x1a9   :  { %v500_v46 = vmax.f32 %v496_v42, 0.0 }
 0x1ab   :  { %699 = vmatprep.mubr.f32.mxu1 %v500_v46  ;;  %779 = vmatprep.mubr.f32.mxu0 %v500_v46 }
 0x1ac   :  { %700 = vmatmul.mubr.f32.vlgmr.msra.gmra.mrb[4].mxu1 %v499_v47  ;;  %780 = vmatmul.mubr.f32.vlgmr.msra.gmra.mrb[4].mxu0 %v499_v47 }
 0x1ad   :  { %1265 = vmatpush3.bf16.msra.mxu1 %v1824_v62  ;;  %849 = vmatprep.mubr.f32.mxu1 %v498_v61 }
 0x1ae   :  { %1267 = vmatprep.subr.bf16.mxu1 %v1826_v3 }
 0x1b1   :  { %1269 = vmatpush3.bf16.msra.mxu1 %v1833_v11 }
 0x1b2   :  { %1271 = vmatprep.subr.bf16.mxu1 %v1836_v12 }
 0x1b5   :  { %1273 = vmatpush3.bf16.msra.mxu1 %v1208_v21 }
 0x1b6   :  { %1275 = vmatprep.subr.bf16.mxu1 %v1210_v23 }
 0x1b9   :  { %1277 = vmatpush3.bf16.msra.mxu1 %v1212_v30 }
 0x1ba   :  { %1279 = vmatprep.subr.bf16.mxu1 %v1214_v32 }
 0x1bd   :  { %1281 = vmatpush3.bf16.msra.mxu1 %v1216_v35 }
 0x1be   :  { %1283 = vmatprep.subr.bf16.mxu1 %v1218_v43 }
 0x1c1   :  { %1285 = vmatpush3.bf16.msra.mxu1 %v1220_v13 }
 0x1c2   :  { %1287 = vmatprep.subr.bf16.mxu1 %v1222_v18 }
 0x1c5   :  { %1289 = vmatpush3.bf16.msra.mxu1 %v1224_v51 }
 0x1c6   :  { %1291 = vmatprep.subr.bf16.mxu1 %v1226_v52 }
 0x1c9   :  { %1293 = vmatpush3.bf16.msra.mxu1 %v1228_v63 }
 0x1cc   :  { %850 = vmatmul.mubr.f32.vlgmr.msra.gmra.mrb[6].mxu1 %v497_v60 }
 0x242   :  { %v930_v2 = vpop.f32.mrb[2].mxu1 }
 0x243   :  { %v931_v16 = vpop.f32.mrb[3].mxu1 }
 0x244   :  { %v932_v19 = vadd.f32 %v931_v16, %v930_v2 }
 0x27f   :  { %v965_v25 = vpop.f32.mrb[4].mxu1  ;;  %v1000_v48 = vpop.f32.mrb[4].mxu0 }
 0x280   :  { %v966_v49 = vpop.f32.mrb[5].mxu1  ;;  %v1001_v54 = vpop.f32.mrb[5].mxu0 }
 0x281   :  { %v967_v55 = vadd.f32 %v966_v49, %v965_v25  ;;  %v1002_v56 = vadd.f32 %v1001_v54, %v1000_v48 }
 0x283   :  { %v705_v59 = vsub.f32 %v932_v19, %v967_v55 }
 0x285   :  { %v713_v61 = vadd.f32 %v896_v58, %v705_v59 }
 0x287   :  { %714 = vst [vmem:[#allocation13] sm:$0xff] %v713_v61 }
 0x288   :  { %1452 = shalt.err (!%p1449_p10)
}
 0x289   :  { %s1453_s2 = scalar_lea.hbm %s1896_s10, 128 }
 0x28a   :  { %p1454_p11 = scmp.ne.s32.totalorder %s1896_s10, %s1453_s2  ;;  %p1457_p12 = scmp.lt.u32.totalorder %s1453_s2, %s1896_s10 }
 0x28c   :  { %p1459_p13 = pnand %p1457_p12, %p1454_p11 }
 0x28e   :  { %1462 = shalt.err (!%p1459_p13)
}
 0x28f   :  { %873 = dma.vmem_to_hbm [thread:$0]  %s871_s3, 128, %s1896_s10, [#allocation4]   ;;  %v897_v3 = vld [vmem:[%s1895_s9] ss:$0 sm:$0xff] }
 0x290   :  { %s1509_s25 = smov [#allocation14]  }
 0x291   :  { %s880_s26 = sshll.u32 %s1509_s25, 4  ;;  %s881_s26 = int_to_ptr.vmem [resolvable:$true] %s880_s26 }
 0x292   :  { %s1463_s27 = scalar_lea.vmem %s881_s26, 128  ;;  %p1468_p1 = scmp.lt.s32.totalorder %s881_s26, %s881_s26 }
 0x293   :  { %p1464_p0 = scmp.ne.s32.totalorder %s881_s26, %s1463_s27  ;;  %p1469_p2 = scmp.lt.s32.totalorder %s1463_s27, %s1463_s27 }
 0x295   :  { %p1470_p3 = por %p1469_p2, %p1468_p1 }
 0x297   :  { %p1471_p4 = pnand %p1470_p3, %p1464_p0 }
 0x29f   :  { %v1035_v50 = vpop.f32.mrb[6].mxu1 }
 0x2a0   :  { %v1036_v60 = vpop.f32.mrb[7].mxu1 }
 0x2a1   :  { %v1037_v62 = vadd.f32 %v1036_v60, %v1035_v50 }
 0x2a3   :  { %v852_v5 = vadd.f32 %v1037_v62, %v1002_v56 }
 0x2a5   :  { %v862_v6 = vadd.f32 %v897_v3, %v852_v5 }
 0x2a7   :  { %863 = vst [vmem:[#allocation14] sm:$0xff] %v862_v6 }
 0x2a8   :  { %1474 = shalt.err (!%p1471_p4)
}
 0x2a9   :  { %s1475_s13 = scalar_lea.hbm %s1897_s11, 128 }
 0x2aa   :  { %p1476_p5 = scmp.ne.s32.totalorder %s1897_s11, %s1475_s13  ;;  %p1479_p6 = scmp.lt.u32.totalorder %s1475_s13, %s1897_s11 }
 0x2ac   :  { %p1481_p7 = pnand %p1479_p6, %p1476_p5 }
 0x2ae   :  { %1484 = shalt.err (!%p1481_p7)
}
 0x2af   :  { %883 = dma.vmem_to_hbm [thread:$0]  %s881_s26, 128, %s1897_s11, [#allocation15]  }
 0x2b0   :  { %1493 = dma.done.wait [#allocation4], 128  }
 0x2b1   :  { %1494 = vsyncadd [#allocation4], 4294967168 }
 0x2b2   :  { %1495 = dma.done.wait [#allocation15], 128  }
 0x2b3   :  { %1496 = vsyncadd [#allocation15], 4294967168 }
 0x2b4   :  { %890 = vsyncpa [#allocation3], 1 }
 0x2b5   :  { %891 = vsyncpa [#allocation6], 1 }
 0x2b6   :  { %892 = vsyncpa [#allocation9], 1 }
 0x2b7   :  { %893 = vsyncpa [#allocation12], 1 }
 0x2b8   :  { %894 = vsyncpa [#allocation4], 1 }
 0x2b9   :  { %895 = vsyncpa [#allocation15], 1 }

</bundles_post_ra>
